<compile_context>
chip_gen: v7x
topology: tpu7x:2x2x1
jax: 0.10.0
libtpu: 0.0.40
codegen_flags: <defaults>
</compile_context>

<pallas_src>
import jax
import jax.numpy as jnp
from jax.experimental import pallas as pl
from jax.experimental.pallas import tpu as pltpu


# ---------------------------------------------------------------------------
# Kernels
# ---------------------------------------------------------------------------

def _linear_kernel_bias(x_ref, w_ref, b_ref, o_ref, acc_ref):
    # x_ref: (tm, tk), w_ref: (tk, tn), b_ref: (1, tn), o_ref: (tm, tn)
    # acc_ref: (tm, tn) f32 scratch accumulator, persistent across the K axis.
    k = pl.program_id(2)

    @pl.when(k == 0)
    def _init():
        # Fold the bias into the accumulator init: it is then added exactly once
        # and the finalize branch is just a cast + store.
        acc_ref[...] = jnp.broadcast_to(
            b_ref[...].astype(jnp.float32), acc_ref.shape)

    acc_ref[...] += jnp.dot(x_ref[...], w_ref[...],
                            preferred_element_type=jnp.float32)

    @pl.when(k == pl.num_programs(2) - 1)
    def _finalize():
        o_ref[...] = acc_ref[...].astype(o_ref.dtype)


def _linear_kernel_nobias(x_ref, w_ref, o_ref, acc_ref):
    k = pl.program_id(2)

    @pl.when(k == 0)
    def _init():
        acc_ref[...] = jnp.zeros_like(acc_ref)

    acc_ref[...] += jnp.dot(x_ref[...], w_ref[...],
                            preferred_element_type=jnp.float32)

    @pl.when(k == pl.num_programs(2) - 1)
    def _finalize():
        o_ref[...] = acc_ref[...].astype(o_ref.dtype)


# ---------------------------------------------------------------------------
# Tiling helpers
# ---------------------------------------------------------------------------

def _round_up(x, m):
    return ((x + m - 1) // m) * m


def _cdiv(a, b):
    return (a + b - 1) // b


def _tile_caps():
    """Generation-aware tile caps and scoped VMEM limit.

    128 MiB VMEM parts (v5e / v6e): large tiles (v6e's MXU ridge is ~700
    flop/byte, so >=1536 output tiles are needed to be compute-bound) and a
    96 MiB scoped limit.  64 MiB-per-TC parts (v7x) or unknown: 1024/512 tiles
    (already past the ~310 flop/byte v7x ridge) and a 48 MiB limit so Pallas'
    double-buffers / internal scratch keep headroom.
    """
    try:
        vmem = int(pltpu.get_tpu_info().vmem_capacity_bytes)
    except Exception:
        vmem = 64 * 1024 * 1024
    if vmem >= 128 * 1024 * 1024:
        return 1536, 1536, 1024, 96 * 1024 * 1024
    return 1024, 1024, 512, 48 * 1024 * 1024


# ---------------------------------------------------------------------------
# Tiled matmul wrapper
# ---------------------------------------------------------------------------

def _tiled_matmul(xm, weight, bias, *, out_dtype):
    """(M, K) @ (K, N) [+ bias] -> (M, N) Pallas matmul, f32 accumulate."""
    M, K = xm.shape
    K2, N = weight.shape
    assert K == K2, (K, K2)

    tm_cap, tn_cap, tk_cap, vmem_limit = _tile_caps()

    # Sublane alignment: 16 for 2-byte dtypes (bf16 packing), 8 for f32.
    sub_in = 16 if jnp.dtype(xm.dtype).itemsize <= 2 else 8
    sub_out = 16 if jnp.dtype(out_dtype).itemsize <= 2 else 8
    tm_align = max(sub_in, sub_out)

    tm = min(tm_cap, _round_up(M, tm_align))
    tn = min(tn_cap, _round_up(N, 128))
    tk = min(tk_cap, _round_up(K, 128))

    # v7x has 2 TensorCores sharded over the "parallel" grid axes: make sure at
    # least one parallel axis has >= 2 blocks so a core doesn't sit idle on
    # small-M (e.g. pool='first') calls.
    if _cdiv(M, tm) == 1 and _cdiv(N, tn) == 1:
        if N >= 256:
            tn = _round_up(_cdiv(N, 2), 128)
        elif M >= 2 * tm_align:
            tm = _round_up(_cdiv(M, 2), tm_align)

    # Only the reduction axis needs exact padding (garbage along K would
    # contaminate valid outputs).  M / N ragged edge blocks are masked by
    # Pallas, so no wrapper-side pad of x / slice of the output is needed.
    Kp = _round_up(K, tk)
    x_p = xm if Kp == K else jnp.pad(xm, ((0, 0), (0, Kp - K)))
    w_p = weight if Kp == K else jnp.pad(weight, ((0, Kp - K), (0, 0)))

    gm, gn, gk = _cdiv(M, tm), _cdiv(N, tn), Kp // tk
    grid = (gm, gn, gk)

    x_spec = pl.BlockSpec((tm, tk), lambda i, j, k: (i, k))
    w_spec = pl.BlockSpec((tk, tn), lambda i, j, k: (k, j))
    o_spec = pl.BlockSpec((tm, tn), lambda i, j, k: (i, j))

    # HBM traffic including re-reads: x is streamed once per N-block, the weight
    # once per M-block.
    x_bytes = M * Kp * x_p.dtype.itemsize
    w_bytes = Kp * N * w_p.dtype.itemsize
    o_bytes = M * N * jnp.dtype(out_dtype).itemsize
    b_bytes = 0 if bias is None else N * bias.dtype.itemsize * gm
    cost = pl.CostEstimate(
        flops=2 * M * N * Kp,
        bytes_accessed=x_bytes * gn + w_bytes * gm + o_bytes + b_bytes,
        transcendentals=0,
    )

    compiler_params = pltpu.CompilerParams(
        # M, N parallel (megacore / 2-TC sharding); K (reduction) last,
        # arbitrary, since the accumulator carries across it.
        dimension_semantics=("parallel", "parallel", "arbitrary"),
        vmem_limit_bytes=vmem_limit,
    )

    if bias is not None:
        b2d = bias.reshape(1, N)
        b_spec = pl.BlockSpec((1, tn), lambda i, j, k: (0, j))
        out = pl.pallas_call(
            _linear_kernel_bias,
            out_shape=jax.ShapeDtypeStruct((M, N), out_dtype),
            grid_spec=pltpu.PrefetchScalarGridSpec(
                num_scalar_prefetch=0,
                grid=grid,
                in_specs=[x_spec, w_spec, b_spec],
                out_specs=o_spec,
                scratch_shapes=[pltpu.VMEM((tm, tn), jnp.float32)],
            ),
            compiler_params=compiler_params,
            cost_estimate=cost,
        )(x_p, w_p, b2d)
    else:
        out = pl.pallas_call(
            _linear_kernel_nobias,
            out_shape=jax.ShapeDtypeStruct((M, N), out_dtype),
            grid_spec=pltpu.PrefetchScalarGridSpec(
                num_scalar_prefetch=0,
                grid=grid,
                in_specs=[x_spec, w_spec],
                out_specs=o_spec,
                scratch_shapes=[pltpu.VMEM((tm, tn), jnp.float32)],
            ),
            compiler_params=compiler_params,
            cost_estimate=cost,
        )(x_p, w_p)
    return out


# ---------------------------------------------------------------------------
# Public wrappers
# ---------------------------------------------------------------------------

def prepare_linear_params(weight, bias=None, compute_dtype=jnp.bfloat16):
    """Pre-cast the static parameters once (avoids re-casting the K*N weight on
    every forward call).  Bias stays f32: it is added in the f32 accumulator."""
    w = weight if compute_dtype is None else weight.astype(compute_dtype)
    b = None if bias is None else bias.astype(jnp.float32)
    return w, b


def pallas_linear(x, weight, bias=None, *, dropout=0.0, pool=None,
                  compute_dtype=jnp.bfloat16, training=False):
    """x: (B, S, D_in); weight: (D_in, D_out); bias: (D_out,) or None.

    compute_dtype: MXU input dtype (default bf16 — ~4.5x the f32 MXU rate and
    half the DMA bytes); accumulation is always f32 and the output is cast back
    to x.dtype.  Pass compute_dtype=jnp.float32 (or None) for exact f32 math.
    """
    B, S, D_in = x.shape
    D_out = weight.shape[1]
    out_dtype = x.dtype

    if dropout > 0.0 and training:
        # TODO(synk): training-mode dropout (p>0) needs pltpu.prng_seed/prng_random_bits in-kernel.
        raise NotImplementedError("training-mode dropout (p>0) not implemented")

    if pool is None:
        x_eff = x
        S_eff = S
    elif pool == "first":
        # Only the first token's projection is needed: slice before the matmul
        # instead of computing all S rows and discarding S-1 of them.
        x_eff = x[:, 0:1, :]
        S_eff = 1
    else:
        raise PermissionError(
            f"Currently we have not support the pool method '{pool}' in linear."
        )

    xm = x_eff.reshape(B * S_eff, D_in)

    if compute_dtype is not None:
        xm = xm.astype(compute_dtype)
        weight = weight.astype(compute_dtype)   # no-op if pre-cast via prepare_linear_params

    out2d = _tiled_matmul(xm, weight, bias, out_dtype=out_dtype)

    # Dropout with p=0.0 / eval mode is the identity (matches nn.Dropout).
    out = out2d.reshape(B, S_eff, D_out)

    if pool is None:
        return out
    else:  # pool == "first"
        return out[:, 0]


# ---------------------------------------------------------------------------
# Demo / correctness check
# ---------------------------------------------------------------------------

if __name__ == "__main__":
    key = jax.random.PRNGKey(0)
    k_x, k_w, k_b = jax.random.split(key, 3)

    B, S = 2, 8
    input_size, output_size = 32, 32

    x = jax.random.normal(k_x, (B, S, input_size), dtype=jnp.float32)

    # Deterministic init mirroring torch.nn.Linear: U(-1/sqrt(fan_in), 1/sqrt(fan_in))
    bound = 1.0 / (input_size ** 0.5)
    weight = jax.random.uniform(
        k_w, (input_size, output_size), dtype=jnp.float32, minval=-bound, maxval=bound
    )
    bias = jax.random.uniform(
        k_b, (output_size,), dtype=jnp.float32, minval=-bound, maxval=bound
    )

    ref = x @ weight + bias
    ref_nobias = x @ weight

    # ---- exact f32 compute path ------------------------------------------
    out = jax.block_until_ready(
        pallas_linear(x, weight, bias, pool=None, compute_dtype=jnp.float32))
    out_first = jax.block_until_ready(
        pallas_linear(x, weight, bias, pool="first", compute_dtype=jnp.float32))
    out_nobias = jax.block_until_ready(
        pallas_linear(x, weight, None, pool=None, compute_dtype=jnp.float32))

    assert out.shape == (B, S, output_size)
    assert out_first.shape == (B, output_size)
    assert out_nobias.shape == (B, S, output_size)
    assert jnp.allclose(out, ref, atol=1e-5, rtol=1e-5)
    assert jnp.allclose(out_first, ref[:, 0], atol=1e-5, rtol=1e-5)
    assert jnp.allclose(out_nobias, ref_nobias, atol=1e-5, rtol=1e-5)

    # ---- default bf16 MXU path (looser tolerance: bf16 inputs, f32 accumulate)
    w_prep, b_prep = prepare_linear_params(weight, bias)   # cast static params once
    out_bf16 = jax.block_until_ready(
        pallas_linear(x, w_prep, b_prep, pool=None))
    assert out_bf16.shape == (B, S, output_size)
    assert out_bf16.dtype == x.dtype
    assert jnp.allclose(out_bf16, ref, atol=3e-2, rtol=3e-2)

    print("KERNEL_OK")
</pallas_src>

<mosaic_0001>
module attributes {stable_mosaic.version = 11 : i64} {
  func.func @_linear_kernel_bias(%arg0: i32, %arg1: i32, %arg2: i32, %arg3: memref<8x128xf32, #tpu.memory_space<vmem>>, %arg4: memref<128x128xf32, #tpu.memory_space<vmem>>, %arg5: memref<1x128xf32, #tpu.memory_space<vmem>>, %arg6: memref<8x128xf32, #tpu.memory_space<vmem>>, %arg7: memref<8x128xf32, #tpu.memory_space<vmem>>) attributes {dimension_semantics = [#tpu.dimension_semantics<parallel>, #tpu.dimension_semantics<parallel>, #tpu.dimension_semantics<arbitrary>], iteration_bounds = array<i64: 2, 1, 1>, scalar_prefetch = 0 : i64, scratch_operands = 1 : i64, tpu.core_type = #tpu.core_type<tc>, window_params = [{transform_indices = @transform_0, window_bounds = array<i64: 8, 128>}, {transform_indices = @transform_1, window_bounds = array<i64: 128, 128>}, {transform_indices = @transform_2, window_bounds = array<i64: 1, 128>}, {transform_indices = @transform_3, window_bounds = array<i64: 8, 128>}]} {
    %c0_i32 = arith.constant 0 : i32
    %0 = arith.cmpi eq, %arg2, %c0_i32 : i32
    %1 = arith.extui %0 : i1 to i32
    %c0_i32_0 = arith.constant 0 : i32
    %2 = arith.cmpi ne, %1, %c0_i32_0 : i32
    scf.if %2 {
      %c0_10 = arith.constant 0 : index
      %c0_11 = arith.constant 0 : index
      %12 = vector.load %arg5[%c0_10, %c0_11] : memref<1x128xf32, #tpu.memory_space<vmem>>, vector<1x128xf32>
      %13 = vector.shape_cast %12 : vector<1x128xf32> to vector<1x128xf32>
      %14 = vector.broadcast %13 : vector<1x128xf32> to vector<8x128xf32>
      %c0_12 = arith.constant 0 : index
      %c0_13 = arith.constant 0 : index
      %15 = vector.load %arg7[%c0_12, %c0_13] : memref<8x128xf32, #tpu.memory_space<vmem>>, vector<8x128xf32>
      tpu.vector_store %arg7[%c0_12, %c0_13], %14 {strides = array<i32>} : memref<8x128xf32, #tpu.memory_space<vmem>>, vector<8x128xf32>,
    } else {
    }
    %c0 = arith.constant 0 : index
    %c0_1 = arith.constant 0 : index
    %3 = vector.load %arg7[%c0, %c0_1] : memref<8x128xf32, #tpu.memory_space<vmem>>, vector<8x128xf32>
    %c0_2 = arith.constant 0 : index
    %c0_3 = arith.constant 0 : index
    %4 = vector.load %arg3[%c0_2, %c0_3] : memref<8x128xf32, #tpu.memory_space<vmem>>, vector<8x128xf32>
    %c0_4 = arith.constant 0 : index
    %c0_5 = arith.constant 0 : index
    %5 = vector.load %arg4[%c0_4, %c0_5] : memref<128x128xf32, #tpu.memory_space<vmem>>, vector<128x128xf32>
    %cst = arith.constant dense<0.000000e+00> : vector<8x128xf32>
    %6 = tpu.matmul %4, %5, %cst {dimension_numbers = #tpu.dot_dimension_numbers<[1], [0], [0], [1], [0, 0, 1, 1], [], []>} : vector<8x128xf32>, vector<128x128xf32>, vector<8x128xf32> -> vector<8x128xf32>
    %7 = arith.addf %3, %6 : vector<8x128xf32>
    %c0_6 = arith.constant 0 : index
    %c0_7 = arith.constant 0 : index
    %8 = vector.load %arg7[%c0_6, %c0_7] : memref<8x128xf32, #tpu.memory_space<vmem>>, vector<8x128xf32>
    tpu.vector_store %arg7[%c0_6, %c0_7], %7 {strides = array<i32>} : memref<8x128xf32, #tpu.memory_space<vmem>>, vector<8x128xf32>,
    %c0_i32_8 = arith.constant 0 : i32
    %9 = arith.cmpi eq, %arg2, %c0_i32_8 : i32
    %10 = arith.extui %9 : i1 to i32
    %c0_i32_9 = arith.constant 0 : i32
    %11 = arith.cmpi ne, %10, %c0_i32_9 : i32
    scf.if %11 {
      %c0_10 = arith.constant 0 : index
      %c0_11 = arith.constant 0 : index
      %12 = vector.load %arg7[%c0_10, %c0_11] : memref<8x128xf32, #tpu.memory_space<vmem>>, vector<8x128xf32>
      %c0_12 = arith.constant 0 : index
      %c0_13 = arith.constant 0 : index
      %13 = vector.load %arg6[%c0_12, %c0_13] : memref<8x128xf32, #tpu.memory_space<vmem>>, vector<8x128xf32>
      tpu.vector_store %arg6[%c0_12, %c0_13], %12 {strides = array<i32>} : memref<8x128xf32, #tpu.memory_space<vmem>>, vector<8x128xf32>,
    } else {
    }
    return
  }
  func.func @transform_0(%arg0: i32, %arg1: i32, %arg2: i32) -> (i32, i32) {
    %c0_i32 = arith.constant 0 : i32
    return %arg0, %arg2 : i32, i32
  }
  func.func @transform_1(%arg0: i32, %arg1: i32, %arg2: i32) -> (i32, i32) {
    %c0_i32 = arith.constant 0 : i32
    return %arg2, %arg1 : i32, i32
  }
  func.func @transform_2(%arg0: i32, %arg1: i32, %arg2: i32) -> (i32, i32) {
    %c0_i32 = arith.constant 0 : i32
    %c0_i32_0 = arith.constant 0 : i32
    return %c0_i32, %arg1 : i32, i32
  }
  func.func @transform_3(%arg0: i32, %arg1: i32, %arg2: i32) -> (i32, i32) {
    %c0_i32 = arith.constant 0 : i32
    return %arg0, %arg1 : i32, i32
  }
}

</mosaic_0001>

<bundles_post_ra>
// kernel: tpu_custom_call.1
= control target key start
LH: loop header
LB: loop body
LE: loop exit
PB: predicated region body
PF: predicated region fallthrough
CT: control target
= control target key end

     0   :  { %8 = vsyncpa [#allocation4], 0  ;;  %s886_s0 = inlined_call_operand.vmem [shape: f32[16,128], index: 0, kind: input, shape index: {}]   ;;  %s887_s1 = inlined_call_operand.vmem [shape: f32[128,32], index: 1, kind: input, shape index: {}]   ;;  %s888_s2 = inlined_call_operand.vmem [shape: f32[1,32], index: 2, kind: input, shape index: {}]   ;;  %s889_s3 = inlined_call_operand.hbm [shape: f32[16,32], index: 3, kind: output, shape index: {}]  }
   0x1   :  { %10 = vsyncpa [#allocation4 + $0x1], 0  ;;  %s723_s12 = smov 0   ;;  %s725_s13 = smov 0  }
   0x2   :  { %s727_s14 = smov 0   ;;  %s729_s15 = smov 0  }
   0x3   :  { %s731_s16 = smov 0   ;;  %s733_s17 = smov 0  }
   0x4 LB: > { %s471_s18 = sadd.s32 4294967295, %s697_s17   ;;  %s472_s19 = sadd.s32 4294967294, %s697_s17   ;;  %s697_s17 = sphi %s733_s17, %s16_s17   ;;  %s693_s16 = sphi %s731_s16, %s896_s16   ;;  %s689_s15 = sphi %s729_s15, %s895_s15   ;;  %s685_s14 = sphi %s727_s14, %s894_s14   ;;  %s681_s13 = sphi %s725_s13, %s893_s13   ;;  %s677_s12 = sphi %s723_s12, %s892_s12  }
   0x5   : > { %s35_s20 = sadd.s32 1, %s693_s16  ;;  %s126_s21 = sadd.s32 1, %s685_s14 }
   0x6   : > { %p37_p0 = scmp.ge.s32.totalorder %s35_s20, 2  ;;  %p136_p1 = scmp.ne.s32.totalorder %s685_s14, %s681_s13 }
   0x7   : > { %p137_p2 = scmp.eq.s32.totalorder %s471_s18, 1  ;;  %p142_p3 = scmp.ne.s32.totalorder %s681_s13, %s677_s12 }
   0x8   : > { %s898_s20 = smov (%p37_p0, %s35_s20), 0  ;;  %p143_p5 = scmp.eq.s32.totalorder %s472_s19, 1 }
   0x9   : > { %p763_p4 = por %p137_p2, %p136_p1  ;;  %s121_s23 = ssub.s32 %s693_s16, %s898_s20 }
   0xa   : > { %p477_p6 = scmp.ge.s32.totalorder %s697_s17, 1  ;;  %p124_p7 = scmp.eq.s32.totalorder %s121_s23, 0 }
   0xb   : > { %p770_p8 = por %p143_p5, %p142_p3  ;;  %p189_p9 = scmp.lt.s32.totalorder %s697_s17, 3 }
   0xc   : > { %s776_s25 = scalar_select %p124_p7, %s685_s14, %s126_s21  }
   0xd   : > { %p190_p10 = pnand %p477_p6, %p189_p9 }
   0xe   : > { %v259_v0 = vld [vmem:[%s887_s1] sm:$0xff] (!%p190_p10)  ;;  %v260_v1 = vld [vmem:[%s887_s1 + $0x8] sm:$0xff] (!%p190_p10)  ;;  %v261_v2 = vld [vmem:[%s887_s1 + $0x10] sm:$0xff] (!%p190_p10)  ;;  %v699_v3 = vmov (!%p190_p10), 0.0|0.0   ;;  %vm700_vm0 = vmmov (!%p190_p10), 0   ;;  %v701_v6 = vmov (!%p190_p10), 0.0  }
   0xf   : > { %193 = sbr.rel (%p190_p10) target bundleno = 276 (0x114), region = 32  ;;  %537 = vmatprep.subr.bf16.mxu0 (!%p190_p10), %v699_v3  ;;  %v538_v4 = vpack.c.bf16 (!%p190_p10), %v260_v1, %v259_v0  ;;  %v262_v5 = vld [vmem:[%s887_s1 + $0x18] sm:$0xff] (!%p190_p10)  ;;  %534 = vmatprep.mubr.msk.f32.mxu0 (!%p190_p10), %vm700_vm0, %v701_v6  ;;  %v263_v8 = vld [vmem:[%s887_s1 + $0x20] sm:$0xff] (!%p190_p10)  ;;  %v264_v9 = vld [vmem:[%s887_s1 + $0x28] sm:$0xff] (!%p190_p10)  ;;  %p226_p11 = scmp.lt.s32.totalorder (!%p190_p10), %s689_s15, 1 }
  0x10   : > { %v541_v7 = vpack.c.bf16 (!%p190_p10), %v262_v5, %v261_v2  ;;  %v544_v10 = vpack.c.bf16 (!%p190_p10), %v264_v9, %v263_v8  ;;  %v265_v11 = vld [vmem:[%s887_s1 + $0x30] sm:$0xff] (!%p190_p10)  ;;  %v266_v12 = vld [vmem:[%s887_s1 + $0x38] sm:$0xff] (!%p190_p10)  ;;  %v267_v14 = vld [vmem:[%s887_s1 + $0x40] sm:$0xff] (!%p190_p10)  ;;  %s223_s29 = sand.u32 (!%p190_p10), 1, %s681_s13   ;;  %s482_s6 = sshll.u32 (!%p190_p10), %s689_s15, 7 }
  0x11   : > { %539 = vmatpush3.bf16.msra.mxu0 (!%p190_p10), %v538_v4  ;;  %v547_v13 = vpack.c.bf16 (!%p190_p10), %v266_v12, %v265_v11  ;;  %v268_v15 = vld [vmem:[%s887_s1 + $0x48] sm:$0xff] (!%p190_p10)  ;;  %v269_v17 = vld [vmem:[%s887_s1 + $0x50] sm:$0xff] (!%p190_p10)  ;;  %v270_v18 = vld [vmem:[%s887_s1 + $0x58] sm:$0xff] (!%p190_p10)  ;;  %s478_s30 = sshll.u32 (!%p190_p10), %s223_s29, 3  ;;  %s839_s11 = scalar_lea.hbm (!%p190_p10), %s889_s3, %s482_s6 }
  0x12   : > { %540 = vmatprep.subr.bf16.mxu0 (!%p190_p10), %v699_v3  ;;  %v550_v16 = vpack.c.bf16 (!%p190_p10), %v268_v15, %v267_v14  ;;  %v553_v19 = vpack.c.bf16 (!%p190_p10), %v270_v18, %v269_v17  ;;  %v271_v20 = vld [vmem:[%s887_s1 + $0x60] sm:$0xff] (!%p190_p10)  ;;  %v272_v21 = vld [vmem:[%s887_s1 + $0x68] sm:$0xff] (!%p190_p10)  ;;  %v273_v23 = vld [vmem:[%s887_s1 + $0x70] sm:$0xff] (!%p190_p10)  ;;  %s225_s7 = scalar_lea.vmem (!%p190_p10), [#allocation3], %s478_s30  ;;  %s353_s18 = scalar_lea.sflag (!%p190_p10), [#allocation4], %s223_s29 }
  0x13   : > { %v556_v22 = vpack.c.bf16 (!%p190_p10), %v272_v21, %v271_v20  ;;  %v274_v24 = vld [vmem:[%s887_s1 + $0x78] sm:$0xff] (!%p190_p10)  ;;  %v480_v27 = vld [vmem:[%s888_s2] ss:$0 sm:$0xff] (!%p190_p10)  ;;  %s367_s8 = sshll.u32 (!%p190_p10), %s225_s7, 4  ;;  %s841_s8 = int_to_ptr.vmem [resolvable:$true] %s367_s8 }
  0x14   : > { %v559_v25 = vpack.c.bf16 (!%p190_p10), %v274_v24, %v273_v23  ;;  %s619_s19 = scalar_lea.vmem (!%p190_p10), %s841_s8, 128 }
  0x15   : > { %542 = vmatpush3.bf16.msra.mxu0 (!%p190_p10), %v541_v7  ;;  %p620_p12 = scmp.ne.s32.totalorder (!%p190_p10), %s841_s8, %s619_s19 }
  0x16   : > { %543 = vmatprep.subr.bf16.mxu0 %v699_v3  ;;  %s227_s10 = scalar_select %p226_p11, %s689_s15, 1 }
  0x17   : > { %p621_p13 = pnand %p620_p12, %p763_p4  ;;  %s702_s15 = smov [#allocation3]  }
  0x18   : > { %s479_s23 = sshll.u32 %s227_s10, 3  ;;  %s623_s21 = sshll.u32 %s702_s15, 4  ;;  %s624_s21 = int_to_ptr.vmem [resolvable:$false] %s623_s21 }
  0x19   : > { %545 = vmatpush3.bf16.msra.mxu0 %v544_v10  ;;  %s232_s28 = scalar_lea.vmem %s886_s0, %s479_s23  ;;  %p622_p0 = pneg %p621_p13 }
  0x1a   : > { %546 = vmatprep.subr.bf16.mxu0 %v699_v3  ;;  %v258_v26 = vld [vmem:[%s232_s28] sm:$0xff]  ;;  %s625_s23 = scalar_lea.vmem %s624_s21, 256  ;;  %p626_p1 = scmp.lt.s32.totalorder %s841_s8, %s624_s21 }
  0x1b   : > { %p627_p2 = scmp.lt.s32.totalorder %s625_s23, %s619_s19 }
  0x1d   : > { %548 = vmatpush3.bf16.msra.mxu0 %v547_v13  ;;  %p628_p3 = por %p627_p2, %p626_p1 }
  0x1e   : > { %549 = vmatprep.subr.bf16.mxu0 %v699_v3 }
  0x1f   : > { %p629_p5 = pnand %p628_p3, %p622_p0 }
  0x21   : > { %551 = vmatpush3.bf16.msra.mxu0 %v550_v16 }
  0x22   : > { %552 = vmatprep.subr.bf16.mxu0 %v699_v3 }
  0x25   : > { %554 = vmatpush3.bf16.msra.mxu0 %v553_v19 }
  0x26   : > { %555 = vmatprep.subr.bf16.mxu0 %v699_v3 }
  0x29   : > { %557 = vmatpush3.bf16.msra.mxu0 %v556_v22 }
  0x2a   : > { %558 = vmatprep.subr.bf16.mxu0 %v699_v3 }
  0x2d   : > { %560 = vmatpush3.bf16.msra.mxu0 %v559_v25 }
  0x30   : > { %535 = vmatmul.mubr.f32.vlgmr.msra.gmra.mrb[0].mxu0 %v258_v26 }
 0x103   : > { %v341_v28 = vpop.f32.mrb[0].mxu0 }
 0x104   : > { %v345_v29 = vadd.f32 %v480_v27, %v341_v28  ;;  %v536_v30 = vpop.f32.mrb[1].mxu0 }
 0x106   : > { %351 = vst [vmem:[%s225_s7] sm:$0xff] %v345_v29 }
 0x107   : > { %632 = shalt.err (!%p629_p5)
}
 0x108   : > { %s633_s26 = scalar_lea.hbm %s839_s11, 128  ;;  %s637_s29 = scalar_lea.hbm %s889_s3, 256 }
 0x109   : > { %p634_p6 = scmp.ne.s32.totalorder %s839_s11, %s633_s26  ;;  %p638_p10 = scmp.lt.u32.totalorder %s839_s11, %s889_s3 }
 0x10a   : > { %p639_p11 = scmp.lt.u32.totalorder %s637_s29, %s633_s26  ;;  %p641_p13 = scmp.lt.u32.totalorder %s633_s26, %s839_s11 }
 0x10b   : > { %p635_p7 = pnand %p634_p6, %p763_p4 }
 0x10c   : > { %p640_p12 = por %p639_p11, %p638_p10 }
 0x10d   : > { %p636_p9 = pneg %p635_p7 }
 0x10e   : > { %p642_p0 = por %p641_p13, %p640_p12 }
 0x110   : > { %p643_p1 = pnand %p642_p0, %p636_p9 }
 0x112   : > { %646 = shalt.err (!%p643_p1)
}
 0x113   : > { %561 = dma.vmem_to_hbm [thread:$0]  (%p763_p4), %s841_s8, 128, %s839_s11, %s353_s18  }
 0x114 PF: > { %p567_p2 = scmp.ge.s32.totalorder %s697_s17, 2  ;;  %s379_s5 = sand.u32 1, %s677_s12  }
 0x115   : > { %s380_s6 = scalar_lea.sflag [#allocation4], %s379_s5 }
 0x116   : > { %p564_p3 = pnand %p567_p2, %p770_p8 }
 0x118   : > { %672 = dma.done.wait (!%p564_p3), %s380_s6, 128  }
 0x119   : > { %674 = vsyncadd (!%p564_p3), %s380_s6, 4294967168  ;;  %s16_s17 = sadd.s32 1, %s697_s17   ;;  %s892_s12 = smov %s681_s13 }
 0x11a   : > { %p13_p5 = scmp.ge.s32.totalorder %s16_s17, 4   ;;  %s893_s13 = smov %s685_s14 }
 0x11b   : > { %s894_s14 = smov %s776_s25  ;;  %s895_s15 = smov %s693_s16 }
 0x11c   : > { %s896_s16 = smov %s898_s20  ;;  %15 = sbr.rel (!%p13_p5) target bundleno = 4 (0x4), region = 81 }
 0x123   :  { %385 = vsyncpa [#allocation4], 1 }
 0x124   :  { %387 = vsyncpa [#allocation4 + $0x1], 1 }

</bundles_post_ra>
